<compile_context>
chip_gen: v7x
topology: tpu7x:2x2x1
jax: 0.10.0
libtpu: 0.0.40
codegen_flags: <defaults>
</compile_context>

<pallas_src>
import jax
import jax.numpy as jnp
from jax.experimental import pallas as pl
from jax.experimental.pallas import tpu as pltpu

DIM_MNIST = 28 * 28      # 784
DIM_PAD = 896            # 7 * 128 — lane-dense padded output width


def _round_up(n, m):
    return ((n + m - 1) // m) * m


# ----------------------------------------------------------------------------
# Kernels
# ----------------------------------------------------------------------------
def _mlp_body(z_ref, w1_ref, b1_ref, w2_ref, b2_ref, w3_ref, b3_ref):
    """Shared 3-layer MLP body. bf16 MXU feeds, f32 accumulation, sigmoid."""
    z = z_ref[...].astype(jnp.bfloat16)
    h1 = jnp.dot(z, w1_ref[...], preferred_element_type=jnp.float32)
    h1 = jnp.maximum(h1 + b1_ref[...], 0.0)

    h2 = jnp.dot(h1.astype(jnp.bfloat16), w2_ref[...],
                 preferred_element_type=jnp.float32)
    h2 = jnp.maximum(h2 + b2_ref[...], 0.0)

    logits = jnp.dot(h2.astype(jnp.bfloat16), w3_ref[...],
                     preferred_element_type=jnp.float32)
    logits = logits + b3_ref[...]
    # sigmoid: EUP exp + EUP approx reciprocal (no VPU divide).
    return pl.reciprocal(1.0 + jnp.exp(-logits), approx=True)


def _dec_mnist_kernel(z_ref, x_ref,
                      w1_ref, b1_ref, w2_ref, b2_ref, w3_ref, b3_ref,
                      rec_ref, loss_ref):
    rec = _mlp_body(z_ref, w1_ref, b1_ref, w2_ref, b2_ref, w3_ref, b3_ref)
    rec_ref[...] = rec.astype(rec_ref.dtype)
    diff = rec - x_ref[...]
    loss_ref[...] = (diff * diff).astype(loss_ref.dtype)


def _dec_mnist_kernel_rec_only(z_ref,
                               w1_ref, b1_ref, w2_ref, b2_ref, w3_ref, b3_ref,
                               rec_ref):
    rec = _mlp_body(z_ref, w1_ref, b1_ref, w2_ref, b2_ref, w3_ref, b3_ref)
    rec_ref[...] = rec.astype(rec_ref.dtype)


# ----------------------------------------------------------------------------
# Params & wrapper
# ----------------------------------------------------------------------------
def init_params(key, latent_dim, dim_mnist=DIM_MNIST):
    """Deterministic init mirroring nn.Linear defaults (U[-1/sqrt(fan_in), +])."""
    dims = [(latent_dim, 128), (128, 512), (512, dim_mnist)]
    params = []
    for (fan_in, fan_out) in dims:
        key, kw, kb = jax.random.split(key, 3)
        bound = 1.0 / (fan_in ** 0.5)
        w = jax.random.uniform(kw, (fan_in, fan_out), jnp.float32, -bound, bound)
        b = jax.random.uniform(kb, (1, fan_out), jnp.float32, -bound, bound)
        params += [w, b]
    return tuple(params)


def prepare_params(params):
    """Cast weights to bf16, keep biases f32, zero-pad the 784 layer to 896."""
    w1, b1, w2, b2, w3, b3 = params
    w3p = jnp.pad(w3, ((0, 0), (0, DIM_PAD - w3.shape[1])))
    b3p = jnp.pad(b3, ((0, 0), (0, DIM_PAD - b3.shape[1])))
    return (w1.astype(jnp.bfloat16), b1.astype(jnp.float32),
            w2.astype(jnp.bfloat16), b2.astype(jnp.float32),
            w3p.astype(jnp.bfloat16), b3p.astype(jnp.float32))


def dec_mnist_forward(z, x, prepared_params, *, tile_b=256):
    """Pallas equivalent of DecMNIST.forward(z, x).

    z: (B, latent_dim) float32
    x: (B, 1, 28, 28) float32 (NCHW) or None
    Returns (rec, rec_loss), both (B, 784) float32.
    """
    w1, b1, w2, b2, w3p, b3p = prepared_params
    B, latent_dim = z.shape

    # Batch padding: sublane-aligned for tiny B, tile-aligned for large B.
    if B <= tile_b:
        bp = max(_round_up(B, 8), 8)
        tb = bp
    else:
        bp = _round_up(B, tile_b)
        tb = tile_b
    grid = (bp // tb,)

    z_p = jnp.pad(z, ((0, bp - B), (0, 0))) if bp != B else z

    def resident(shape):
        # Constant block index -> weights stay VMEM-resident across the grid.
        return pl.BlockSpec(shape, lambda i: (0, 0))

    def tiled(d):
        return pl.BlockSpec((tb, d), lambda i: (i, 0))

    cparams = pltpu.CompilerParams(dimension_semantics=("parallel",))

    weight_specs = [resident(w1.shape), resident(b1.shape),
                    resident(w2.shape), resident(b2.shape),
                    resident(w3p.shape), resident(b3p.shape)]

    if x is None:
        # Matches `torch.zeros_like(rec)`: skip the MSE path entirely.
        rec_p = pl.pallas_call(
            _dec_mnist_kernel_rec_only,
            out_shape=jax.ShapeDtypeStruct((bp, DIM_PAD), jnp.float32),
            grid=grid,
            in_specs=[tiled(latent_dim)] + weight_specs,
            out_specs=tiled(DIM_PAD),
            compiler_params=cparams,
        )(z_p, w1, b1, w2, b2, w3p, b3p)
        rec = rec_p[:B, :DIM_MNIST]
        return rec, jnp.zeros_like(rec)

    x_flat = x.reshape(B, DIM_MNIST)                       # x.view(-1, 28*28)
    x_p = jnp.pad(x_flat, ((0, bp - B), (0, DIM_PAD - DIM_MNIST)))

    rec_p, loss_p = pl.pallas_call(
        _dec_mnist_kernel,
        out_shape=(jax.ShapeDtypeStruct((bp, DIM_PAD), jnp.float32),
                   jax.ShapeDtypeStruct((bp, DIM_PAD), jnp.float32)),
        grid=grid,
        in_specs=[tiled(latent_dim), tiled(DIM_PAD)] + weight_specs,
        out_specs=(tiled(DIM_PAD), tiled(DIM_PAD)),
        compiler_params=cparams,
    )(z_p, x_p, w1, b1, w2, b2, w3p, b3p)

    return rec_p[:B, :DIM_MNIST], loss_p[:B, :DIM_MNIST]


# ----------------------------------------------------------------------------
# Example / sanity check
# ----------------------------------------------------------------------------
if __name__ == "__main__":
    latent_dim = 16
    B = 2

    key = jax.random.PRNGKey(0)
    kp, kz, kx = jax.random.split(key, 3)

    params = init_params(kp, latent_dim)
    prep = prepare_params(params)

    z = jax.random.normal(kz, (B, latent_dim), jnp.float32)
    # x like a PyTorch MNIST batch: NCHW, values in [0, 1]
    x = jax.random.uniform(kx, (B, 1, 28, 28), jnp.float32)

    fwd = jax.jit(lambda z, x: dec_mnist_forward(z, x, prep))
    rec, rec_loss = fwd(z, x)
    jax.block_until_ready((rec, rec_loss))

    # Reference on the same bf16-weight / f32-accumulate path (exact sigmoid).
    w1b, b1f, w2b, b2f, w3b, b3f = prep
    h1 = jnp.maximum(jnp.dot(z.astype(jnp.bfloat16), w1b,
                             preferred_element_type=jnp.float32) + b1f, 0.0)
    h2 = jnp.maximum(jnp.dot(h1.astype(jnp.bfloat16), w2b,
                             preferred_element_type=jnp.float32) + b2f, 0.0)
    logits = jnp.dot(h2.astype(jnp.bfloat16), w3b,
                     preferred_element_type=jnp.float32) + b3f
    rec_ref = jax.nn.sigmoid(logits)[:, :DIM_MNIST]
    loss_ref = (rec_ref - x.reshape(B, -1)) ** 2

    # Tolerance accommodates the approx-reciprocal sigmoid (~1e-3 level).
    assert jnp.allclose(rec, rec_ref, atol=1e-2), "rec mismatch"
    assert jnp.allclose(rec_loss, loss_ref, atol=1e-2), "loss mismatch"

    # Also exercise the x=None (rec-only) path.
    rec2, loss2 = jax.jit(lambda z: dec_mnist_forward(z, None, prep))(z)
    jax.block_until_ready((rec2, loss2))
    assert jnp.allclose(rec2, rec_ref, atol=1e-2), "rec (x=None) mismatch"
    assert jnp.all(loss2 == 0.0), "loss (x=None) should be zeros"

    print("KERNEL_OK")
</pallas_src>

<mosaic_0001>
module attributes {stable_mosaic.version = 11 : i64} {
  func.func @_dec_mnist_kernel(%arg0: i32, %arg1: memref<8x16xf32, #tpu.memory_space<vmem>>, %arg2: memref<8x896xf32, #tpu.memory_space<vmem>>, %arg3: memref<16x128xbf16, #tpu.memory_space<vmem>>, %arg4: memref<1x128xf32, #tpu.memory_space<vmem>>, %arg5: memref<128x512xbf16, #tpu.memory_space<vmem>>, %arg6: memref<1x512xf32, #tpu.memory_space<vmem>>, %arg7: memref<512x896xbf16, #tpu.memory_space<vmem>>, %arg8: memref<1x896xf32, #tpu.memory_space<vmem>>, %arg9: memref<8x896xf32, #tpu.memory_space<vmem>>, %arg10: memref<8x896xf32, #tpu.memory_space<vmem>>) attributes {dimension_semantics = [#tpu.dimension_semantics<parallel>], iteration_bounds = array<i64: 1>, scalar_prefetch = 0 : i64, scratch_operands = 0 : i64, tpu.core_type = #tpu.core_type<tc>, window_params = [{transform_indices = @transform_0, window_bounds = array<i64: 8, 16>}, {transform_indices = @transform_1, window_bounds = array<i64: 8, 896>}, {pipeline_mode = #tpu.pipeline_mode<synchronous>, transform_indices = @transform_2, window_bounds = array<i64: 16, 128>}, {pipeline_mode = #tpu.pipeline_mode<synchronous>, transform_indices = @transform_3, window_bounds = array<i64: 1, 128>}, {pipeline_mode = #tpu.pipeline_mode<synchronous>, transform_indices = @transform_4, window_bounds = array<i64: 128, 512>}, {pipeline_mode = #tpu.pipeline_mode<synchronous>, transform_indices = @transform_5, window_bounds = array<i64: 1, 512>}, {pipeline_mode = #tpu.pipeline_mode<synchronous>, transform_indices = @transform_6, window_bounds = array<i64: 512, 896>}, {pipeline_mode = #tpu.pipeline_mode<synchronous>, transform_indices = @transform_7, window_bounds = array<i64: 1, 896>}, {transform_indices = @transform_8, window_bounds = array<i64: 8, 896>}, {transform_indices = @transform_9, window_bounds = array<i64: 8, 896>}]} {
    %c0 = arith.constant 0 : index
    %c0_0 = arith.constant 0 : index
    %0 = vector.load %arg1[%c0, %c0_0] : memref<8x16xf32, #tpu.memory_space<vmem>>, vector<8x16xf32>
    %1 = arith.truncf %0 : vector<8x16xf32> to vector<8x16xbf16>
    %c0_1 = arith.constant 0 : index
    %c0_2 = arith.constant 0 : index
    %2 = vector.load %arg3[%c0_1, %c0_2] : memref<16x128xbf16, #tpu.memory_space<vmem>>, vector<16x128xbf16>
    %cst = arith.constant dense<0.000000e+00> : vector<8x128xf32>
    %3 = tpu.matmul %1, %2, %cst {dimension_numbers = #tpu.dot_dimension_numbers<[1], [0], [0], [1], [0, 0, 1, 1], [], []>} : vector<8x16xbf16>, vector<16x128xbf16>, vector<8x128xf32> -> vector<8x128xf32>
    %c0_3 = arith.constant 0 : index
    %c0_4 = arith.constant 0 : index
    %4 = vector.load %arg4[%c0_3, %c0_4] : memref<1x128xf32, #tpu.memory_space<vmem>>, vector<1x128xf32>
    %5 = vector.broadcast %4 : vector<1x128xf32> to vector<8x128xf32>
    %6 = arith.addf %3, %5 : vector<8x128xf32>
    %cst_5 = arith.constant 0.000000e+00 : f32
    %7 = vector.broadcast %cst_5 : f32 to vector<8x128xf32>
    %8 = arith.maximumf %6, %7 : vector<8x128xf32>
    %9 = arith.truncf %8 : vector<8x128xf32> to vector<8x128xbf16>
    %c0_6 = arith.constant 0 : index
    %c0_7 = arith.constant 0 : index
    %10 = vector.load %arg5[%c0_6, %c0_7] : memref<128x512xbf16, #tpu.memory_space<vmem>>, vector<128x512xbf16>
    %cst_8 = arith.constant dense<0.000000e+00> : vector<8x512xf32>
    %11 = tpu.matmul %9, %10, %cst_8 {dimension_numbers = #tpu.dot_dimension_numbers<[1], [0], [0], [1], [0, 0, 1, 1], [], []>} : vector<8x128xbf16>, vector<128x512xbf16>, vector<8x512xf32> -> vector<8x512xf32>
    %c0_9 = arith.constant 0 : index
    %c0_10 = arith.constant 0 : index
    %12 = vector.load %arg6[%c0_9, %c0_10] : memref<1x512xf32, #tpu.memory_space<vmem>>, vector<1x512xf32>
    %13 = vector.broadcast %12 : vector<1x512xf32> to vector<8x512xf32>
    %14 = arith.addf %11, %13 : vector<8x512xf32>
    %cst_11 = arith.constant 0.000000e+00 : f32
    %15 = vector.broadcast %cst_11 : f32 to vector<8x512xf32>
    %16 = arith.maximumf %14, %15 : vector<8x512xf32>
    %17 = arith.truncf %16 : vector<8x512xf32> to vector<8x512xbf16>
    %c0_12 = arith.constant 0 : index
    %c0_13 = arith.constant 0 : index
    %18 = vector.load %arg7[%c0_12, %c0_13] : memref<512x896xbf16, #tpu.memory_space<vmem>>, vector<512x896xbf16>
    %cst_14 = arith.constant dense<0.000000e+00> : vector<8x896xf32>
    %19 = tpu.matmul %17, %18, %cst_14 {dimension_numbers = #tpu.dot_dimension_numbers<[1], [0], [0], [1], [0, 0, 1, 1], [], []>} : vector<8x512xbf16>, vector<512x896xbf16>, vector<8x896xf32> -> vector<8x896xf32>
    %c0_15 = arith.constant 0 : index
    %c0_16 = arith.constant 0 : index
    %20 = vector.load %arg8[%c0_15, %c0_16] : memref<1x896xf32, #tpu.memory_space<vmem>>, vector<1x896xf32>
    %21 = vector.broadcast %20 : vector<1x896xf32> to vector<8x896xf32>
    %22 = arith.addf %19, %21 : vector<8x896xf32>
    %cst_17 = arith.constant 0.000000e+00 : f32
    %23 = vector.broadcast %cst_17 : f32 to vector<8x896xf32>
    %24 = arith.subf %23, %22 : vector<8x896xf32>
    %25 = math.exp %24 : vector<8x896xf32>
    %cst_18 = arith.constant 1.000000e+00 : f32
    %26 = vector.broadcast %cst_18 : f32 to vector<8x896xf32>
    %27 = arith.addf %26, %25 : vector<8x896xf32>
    %28 = tpu.reciprocal %27 {approx = true} : vector<8x896xf32> -> vector<8x896xf32>
    %c0_19 = arith.constant 0 : index
    %c0_20 = arith.constant 0 : index
    %29 = vector.load %arg9[%c0_19, %c0_20] : memref<8x896xf32, #tpu.memory_space<vmem>>, vector<8x896xf32>
    tpu.vector_store %arg9[%c0_19, %c0_20], %28 {strides = array<i32>} : memref<8x896xf32, #tpu.memory_space<vmem>>, vector<8x896xf32>,
    %c0_21 = arith.constant 0 : index
    %c0_22 = arith.constant 0 : index
    %30 = vector.load %arg2[%c0_21, %c0_22] : memref<8x896xf32, #tpu.memory_space<vmem>>, vector<8x896xf32>
    %31 = arith.subf %28, %30 : vector<8x896xf32>
    %32 = arith.mulf %31, %31 : vector<8x896xf32>
    %c0_23 = arith.constant 0 : index
    %c0_24 = arith.constant 0 : index
    %33 = vector.load %arg10[%c0_23, %c0_24] : memref<8x896xf32, #tpu.memory_space<vmem>>, vector<8x896xf32>
    tpu.vector_store %arg10[%c0_23, %c0_24], %32 {strides = array<i32>} : memref<8x896xf32, #tpu.memory_space<vmem>>, vector<8x896xf32>,
    return
  }
  func.func @transform_0(%arg0: i32) -> (i32, i32) {
    %c0_i32 = arith.constant 0 : i32
    %c0_i32_0 = arith.constant 0 : i32
    return %arg0, %c0_i32 : i32, i32
  }
  func.func @transform_1(%arg0: i32) -> (i32, i32) {
    %c0_i32 = arith.constant 0 : i32
    %c0_i32_0 = arith.constant 0 : i32
    return %arg0, %c0_i32 : i32, i32
  }
  func.func @transform_2(%arg0: i32) -> (i32, i32) {
    %c0_i32 = arith.constant 0 : i32
    %c0_i32_0 = arith.constant 0 : i32
    %c0_i32_1 = arith.constant 0 : i32
    return %c0_i32, %c0_i32_0 : i32, i32
  }
  func.func @transform_3(%arg0: i32) -> (i32, i32) {
    %c0_i32 = arith.constant 0 : i32
    %c0_i32_0 = arith.constant 0 : i32
    %c0_i32_1 = arith.constant 0 : i32
    return %c0_i32, %c0_i32_0 : i32, i32
  }
  func.func @transform_4(%arg0: i32) -> (i32, i32) {
    %c0_i32 = arith.constant 0 : i32
    %c0_i32_0 = arith.constant 0 : i32
    %c0_i32_1 = arith.constant 0 : i32
    return %c0_i32, %c0_i32_0 : i32, i32
  }
  func.func @transform_5(%arg0: i32) -> (i32, i32) {
    %c0_i32 = arith.constant 0 : i32
    %c0_i32_0 = arith.constant 0 : i32
    %c0_i32_1 = arith.constant 0 : i32
    return %c0_i32, %c0_i32_0 : i32, i32
  }
  func.func @transform_6(%arg0: i32) -> (i32, i32) {
    %c0_i32 = arith.constant 0 : i32
    %c0_i32_0 = arith.constant 0 : i32
    %c0_i32_1 = arith.constant 0 : i32
    return %c0_i32, %c0_i32_0 : i32, i32
  }
  func.func @transform_7(%arg0: i32) -> (i32, i32) {
    %c0_i32 = arith.constant 0 : i32
    %c0_i32_0 = arith.constant 0 : i32
    %c0_i32_1 = arith.constant 0 : i32
    return %c0_i32, %c0_i32_0 : i32, i32
  }
  func.func @transform_8(%arg0: i32) -> (i32, i32) {
    %c0_i32 = arith.constant 0 : i32
    %c0_i32_0 = arith.constant 0 : i32
    return %arg0, %c0_i32 : i32, i32
  }
  func.func @transform_9(%arg0: i32) -> (i32, i32) {
    %c0_i32 = arith.constant 0 : i32
    %c0_i32_0 = arith.constant 0 : i32
    return %arg0, %c0_i32 : i32, i32
  }
}

</mosaic_0001>

<bundles_post_ra>
// kernel: _lambda_.1
= control target key start
LH: loop header
LB: loop body
LE: loop exit
PB: predicated region body
PF: predicated region fallthrough
CT: control target
= control target key end

     0   :  { %v2977_v0 = vmov 0.0   ;;  %vm2978_vm0 = vmmov 0   ;;  %vm49_vm1 = vcmask 130048   ;;  %v2979_v21 = vmov 0   ;;  %s3945_s2 = inlined_call_operand.vmem [shape: bf16[16,128], index: 2, kind: input, shape index: {}]   ;;  %s3946_s0 = inlined_call_operand.vmem [shape: f32[8,16], index: 0, kind: input, shape index: {}]   ;;  %s3947_s4 = inlined_call_operand.vmem [shape: bf16[128,512], index: 4, kind: input, shape index: {}]   ;;  %s3948_s6 = inlined_call_operand.vmem [shape: bf16[512,896], index: 6, kind: input, shape index: {}]   ;;  %s3949_s3 = inlined_call_operand.vmem [shape: f32[1,128], index: 3, kind: input, shape index: {}]   ;;  %s3950_s5 = inlined_call_operand.vmem [shape: f32[1,512], index: 5, kind: input, shape index: {}]   ;;  %s3951_s7 = inlined_call_operand.vmem [shape: f32[1,896], index: 7, kind: input, shape index: {}]   ;;  %s3952_s1 = inlined_call_operand.vmem [shape: f32[8,896], index: 1, kind: input, shape index: {}]   ;;  %s3953_s8 = inlined_call_operand.vmem [shape: f32[8,896], index: 8, kind: output, shape index: {0}]   ;;  %s3954_s9 = inlined_call_operand.vmem [shape: f32[8,896], index: 9, kind: output, shape index: {1}]  }
   0x1   :  { %2553 = vmatprep.subr.bf16.mxu0 %v2977_v0  ;;  %v2580_v1 = vld [vmem:[%s3945_s2] sm:$0xff]   ;;  %2555 = vmatprep.mubr.msk.bf16.mxu0 %vm2978_vm0, %v2977_v0  ;;  %v2607_v20 = vld [vmem:[%s3947_s4 + $0xc] ss:$16 sps:$4 sm:$0xff]   ;;  %v2640_v25 = vld [vmem:[%s3948_s6 + $0x38] ss:$28 sps:$4 sm:$0xff]  }
   0x2   :  { %v32_v2 = vld [vmem:[%s3946_s0] sm:$0xff]  ;;  %2554 = vmatpush3.bf16.msra.mxu0 %v2580_v1  ;;  %v2635_v24 = vld [vmem:[%s3948_s6 + $0x3c] ss:$28 sps:$4 sm:$0xff]   ;;  %v2641_v26 = vld [vmem:[%s3948_s6 + $0x74] ss:$28 sps:$4 sm:$0xff]  }
   0x3   :  { %v33_v3 = vpack.c.bf16 %v32_v2, %v32_v2  ;;  %v2581_v4 = vld [vmem:[%s3947_s4] ss:$16 sps:$4 sm:$0xff]   ;;  %v2583_v5 = vld [vmem:[%s3947_s4 + $0x4] ss:$16 sps:$4 sm:$0xff]   ;;  %v2647_v28 = vld [vmem:[%s3948_s6 + $0xac] ss:$28 sps:$4 sm:$0xff]  }
   0x4   :  { %v2586_v6 = vld [vmem:[%s3947_s4 + $0x24] ss:$16 sps:$4 sm:$0xff]   ;;  %309 = vmatprep.subr.bf16.mxu0 %v2583_v5  ;;  %v2584_v7 = vld [vmem:[%s3947_s4 + $0x20] ss:$16 sps:$4 sm:$0xff]   ;;  %v2659_v32 = vld [vmem:[%s3948_s6 + $0x11c] ss:$28 sps:$4 sm:$0xff]  }
   0x5   :  { %2556 = vmatmul.mubr.msk.bf16.vlgmr.msra.gmra.mrb[0].mxu0 %vm49_vm1, %v33_v3  ;;  %v2589_v8 = vld [vmem:[%s3947_s4 + $0x44] ss:$16 sps:$4 sm:$0xff]   ;;  %v2587_v9 = vld [vmem:[%s3947_s4 + $0x40] ss:$16 sps:$4 sm:$0xff]   ;;  %v2671_v36 = vld [vmem:[%s3948_s6 + $0x18c] ss:$28 sps:$4 sm:$0xff]  }
   0x6   :  { %310 = vmatpush1.bf16.msra.mxu0 %v2581_v4  ;;  %v2592_v10 = vld [vmem:[%s3947_s4 + $0x64] ss:$16 sps:$4 sm:$0xff]   ;;  %v2590_v11 = vld [vmem:[%s3947_s4 + $0x60] ss:$16 sps:$4 sm:$0xff]   ;;  %341 = vmatprep.mubr.bf16.mxu0 %v2979_v21  ;;  %v2683_v40 = vld [vmem:[%s3948_s6 + $0x1fc] ss:$28 sps:$4 sm:$0xff]  }
   0x7   :  { %311 = vmatprep.subr.bf16.mxu0 %v2586_v6  ;;  %v2595_v12 = vld [vmem:[%s3947_s4 + $0x84] ss:$16 sps:$4 sm:$0xff]   ;;  %v2593_v13 = vld [vmem:[%s3947_s4 + $0x80] ss:$16 sps:$4 sm:$0xff]   ;;  %v2695_v44 = vld [vmem:[%s3948_s6 + $0x26c] ss:$28 sps:$4 sm:$0xff]  }
   0x8   :  { %v2598_v14 = vld [vmem:[%s3947_s4 + $0xa4] ss:$16 sps:$4 sm:$0xff]   ;;  %v2596_v15 = vld [vmem:[%s3947_s4 + $0xa0] ss:$16 sps:$4 sm:$0xff]   ;;  %v2707_v48 = vld [vmem:[%s3948_s6 + $0x2dc] ss:$28 sps:$4 sm:$0xff]  }
   0x9   :  { %v2601_v16 = vld [vmem:[%s3947_s4 + $0xc4] ss:$16 sps:$4 sm:$0xff]   ;;  %v2599_v17 = vld [vmem:[%s3947_s4 + $0xc0] ss:$16 sps:$4 sm:$0xff]   ;;  %v2605_v55 = vld [vmem:[%s3947_s4 + $0x8] ss:$16 sps:$4 sm:$0xff]  }
   0xa   :  { %312 = vmatpush1.bf16.msra.mxu0 %v2584_v7  ;;  %v2604_v18 = vld [vmem:[%s3947_s4 + $0xe4] ss:$16 sps:$4 sm:$0xff]   ;;  %v2602_v19 = vld [vmem:[%s3947_s4 + $0xe0] ss:$16 sps:$4 sm:$0xff]   ;;  %v2610_v58 = vld [vmem:[%s3947_s4 + $0x2c] ss:$16 sps:$4 sm:$0xff]  }
   0xb   :  { %313 = vmatprep.subr.bf16.mxu0 %v2589_v8  ;;  %v2629_v22 = vld [vmem:[%s3948_s6 + $0x4] ss:$28 sps:$4 sm:$0xff]   ;;  %v2646_v27 = vld [vmem:[%s3948_s6 + $0x70] ss:$28 sps:$4 sm:$0xff]   ;;  %v2664_v33 = vld [vmem:[%s3948_s6 + $0x118] ss:$28 sps:$4 sm:$0xff]  }
   0xc   :  { %1844 = vmatprep.subr.bf16.mxu1 %v2629_v22  ;;  %v2634_v23 = vld [vmem:[%s3948_s6] ss:$28 sps:$4 sm:$0xff]   ;;  %v2652_v29 = vld [vmem:[%s3948_s6 + $0xa8] ss:$28 sps:$4 sm:$0xff]   ;;  %v2665_v34 = vld [vmem:[%s3948_s6 + $0x154] ss:$28 sps:$4 sm:$0xff]  }
   0xd   :  { %1845 = vmatpush1.bf16.msra.mxu1 %v2634_v23  ;;  %v2653_v30 = vld [vmem:[%s3948_s6 + $0xe4] ss:$28 sps:$4 sm:$0xff]   ;;  %v2670_v35 = vld [vmem:[%s3948_s6 + $0x150] ss:$28 sps:$4 sm:$0xff]   ;;  %v2688_v41 = vld [vmem:[%s3948_s6 + $0x1f8] ss:$28 sps:$4 sm:$0xff]  }
   0xe   :  { %314 = vmatpush1.bf16.msra.mxu0 %v2587_v9  ;;  %1846 = vmatprep.subr.bf16.mxu1 %v2635_v24  ;;  %v2658_v31 = vld [vmem:[%s3948_s6 + $0xe0] ss:$28 sps:$4 sm:$0xff]   ;;  %v2676_v37 = vld [vmem:[%s3948_s6 + $0x188] ss:$28 sps:$4 sm:$0xff]   ;;  %v2689_v42 = vld [vmem:[%s3948_s6 + $0x234] ss:$28 sps:$4 sm:$0xff]  }
   0xf   :  { %315 = vmatprep.subr.bf16.mxu0 %v2592_v10  ;;  %v2677_v38 = vld [vmem:[%s3948_s6 + $0x1c4] ss:$28 sps:$4 sm:$0xff]   ;;  %v2694_v43 = vld [vmem:[%s3948_s6 + $0x230] ss:$28 sps:$4 sm:$0xff]   ;;  %v2712_v49 = vld [vmem:[%s3948_s6 + $0x2d8] ss:$28 sps:$4 sm:$0xff]  }
  0x10   :  { %v2682_v39 = vld [vmem:[%s3948_s6 + $0x1c0] ss:$28 sps:$4 sm:$0xff]   ;;  %v2700_v45 = vld [vmem:[%s3948_s6 + $0x268] ss:$28 sps:$4 sm:$0xff]   ;;  %v2667_v22 = vld [vmem:[%s3948_s6 + $0x158] ss:$28 sps:$4 sm:$0xff]  }
  0x11   :  { %1847 = vmatpush1.bf16.msra.mxu1 %v2640_v25  ;;  %v2701_v46 = vld [vmem:[%s3948_s6 + $0x2a4] ss:$28 sps:$4 sm:$0xff]   ;;  %v2608_v60 = vld [vmem:[%s3947_s4 + $0x28] ss:$16 sps:$4 sm:$0xff]   ;;  %v2613_v61 = vld [vmem:[%s3947_s4 + $0x4c] ss:$16 sps:$4 sm:$0xff]  }
  0x12   :  { %316 = vmatpush1.bf16.msra.mxu0 %v2590_v11  ;;  %1848 = vmatprep.subr.bf16.mxu1 %v2641_v26  ;;  %v2706_v47 = vld [vmem:[%s3948_s6 + $0x2a0] ss:$28 sps:$4 sm:$0xff]   ;;  %v2611_v62 = vld [vmem:[%s3947_s4 + $0x48] ss:$16 sps:$4 sm:$0xff]   ;;  %v2675_v23 = vld [vmem:[%s3948_s6 + $0x194] ss:$28 sps:$4 sm:$0xff]  }
  0x13   :  { %317 = vmatprep.subr.bf16.mxu0 %v2595_v12  ;;  %v2248_v50 = vld [vmem:[%s3949_s3] ss:$0 sm:$0xff]  ;;  %v2616_v63 = vld [vmem:[%s3947_s4 + $0x6c] ss:$16 sps:$4 sm:$0xff]   ;;  %v2614_v0 = vld [vmem:[%s3947_s4 + $0x68] ss:$16 sps:$4 sm:$0xff]  }
  0x14   :  { %v2619_v1 = vld [vmem:[%s3947_s4 + $0x8c] ss:$16 sps:$4 sm:$0xff]   ;;  %v2617_v2 = vld [vmem:[%s3947_s4 + $0x88] ss:$16 sps:$4 sm:$0xff]   ;;  %v2639_v11 = vld [vmem:[%s3948_s6 + $0x44] ss:$28 sps:$4 sm:$0xff]  }
  0x15   :  { %1849 = vmatpush1.bf16.msra.mxu1 %v2646_v27  ;;  %v2622_v3 = vld [vmem:[%s3947_s4 + $0xac] ss:$16 sps:$4 sm:$0xff]   ;;  %v2620_v4 = vld [vmem:[%s3947_s4 + $0xa8] ss:$16 sps:$4 sm:$0xff]   ;;  %v2687_v27 = vld [vmem:[%s3948_s6 + $0x204] ss:$28 sps:$4 sm:$0xff]  }
  0x16   :  { %318 = vmatpush1.bf16.msra.mxu0 %v2593_v13  ;;  %1850 = vmatprep.subr.bf16.mxu1 %v2647_v28  ;;  %v2625_v5 = vld [vmem:[%s3947_s4 + $0xcc] ss:$16 sps:$4 sm:$0xff]   ;;  %v2623_v6 = vld [vmem:[%s3947_s4 + $0xc8] ss:$16 sps:$4 sm:$0xff]  }
  0x17   :  { %319 = vmatprep.subr.bf16.mxu0 %v2598_v14  ;;  %v2628_v7 = vld [vmem:[%s3947_s4 + $0xec] ss:$16 sps:$4 sm:$0xff]   ;;  %v2626_v8 = vld [vmem:[%s3947_s4 + $0xe8] ss:$16 sps:$4 sm:$0xff]  }
  0x18   :  { %v2633_v9 = vld [vmem:[%s3948_s6 + $0xc] ss:$28 sps:$4 sm:$0xff]   ;;  %v2637_v12 = vld [vmem:[%s3948_s6 + $0x40] ss:$28 sps:$4 sm:$0xff]   ;;  %v2643_v14 = vld [vmem:[%s3948_s6 + $0x78] ss:$28 sps:$4 sm:$0xff]  }
  0x19   :  { %1851 = vmatpush1.bf16.msra.mxu1 %v2652_v29  ;;  %v2631_v10 = vld [vmem:[%s3948_s6 + $0x8] ss:$28 sps:$4 sm:$0xff]   ;;  %v2645_v13 = vld [vmem:[%s3948_s6 + $0x7c] ss:$28 sps:$4 sm:$0xff]   ;;  %v2673_v24 = vld [vmem:[%s3948_s6 + $0x190] ss:$28 sps:$4 sm:$0xff]  }
  0x1a   :  { %320 = vmatpush1.bf16.msra.mxu0 %v2596_v15  ;;  %1852 = vmatprep.subr.bf16.mxu1 %v2653_v30  ;;  %v2651_v15 = vld [vmem:[%s3948_s6 + $0xb4] ss:$28 sps:$4 sm:$0xff]   ;;  %v2681_v25 = vld [vmem:[%s3948_s6 + $0x1cc] ss:$28 sps:$4 sm:$0xff]   ;;  %v2685_v28 = vld [vmem:[%s3948_s6 + $0x200] ss:$28 sps:$4 sm:$0xff]  }
  0x1b   :  { %321 = vmatprep.subr.bf16.mxu0 %v2601_v16  ;;  %v2649_v16 = vld [vmem:[%s3948_s6 + $0xb0] ss:$28 sps:$4 sm:$0xff]   ;;  %v2679_v26 = vld [vmem:[%s3948_s6 + $0x1c8] ss:$28 sps:$4 sm:$0xff]   ;;  %v2693_v29 = vld [vmem:[%s3948_s6 + $0x23c] ss:$28 sps:$4 sm:$0xff]  }
  0x1c   :  { %v2691_v30 = vld [vmem:[%s3948_s6 + $0x238] ss:$28 sps:$4 sm:$0xff]  }
  0x1d   :  { %1853 = vmatpush1.bf16.msra.mxu1 %v2658_v31  ;;  %v2699_v31 = vld [vmem:[%s3948_s6 + $0x274] ss:$28 sps:$4 sm:$0xff]  }
  0x1e   :  { %322 = vmatpush1.bf16.msra.mxu0 %v2599_v17  ;;  %1854 = vmatprep.subr.bf16.mxu1 %v2659_v32  ;;  %v2657_v17 = vld [vmem:[%s3948_s6 + $0xec] ss:$28 sps:$4 sm:$0xff]  }
  0x1f   :  { %323 = vmatprep.subr.bf16.mxu0 %v2604_v18  ;;  %v2655_v18 = vld [vmem:[%s3948_s6 + $0xe8] ss:$28 sps:$4 sm:$0xff]   ;;  %v2697_v32 = vld [vmem:[%s3948_s6 + $0x270] ss:$28 sps:$4 sm:$0xff]  }
  0x21   :  { %1855 = vmatpush1.bf16.msra.mxu1 %v2664_v33  ;;  %v2705_v33 = vld [vmem:[%s3948_s6 + $0x2ac] ss:$28 sps:$4 sm:$0xff]  }
  0x22   :  { %324 = vmatpush1.bf16.msra.mxu0 %v2602_v19  ;;  %1856 = vmatprep.subr.bf16.mxu1 %v2665_v34  ;;  %v2663_v19 = vld [vmem:[%s3948_s6 + $0x124] ss:$28 sps:$4 sm:$0xff]  }
  0x23   :  { %350 = vmatprep.subr.bf16.mxu0 %v2607_v20  ;;  %v2661_v20 = vld [vmem:[%s3948_s6 + $0x120] ss:$28 sps:$4 sm:$0xff]   ;;  %v2703_v34 = vld [vmem:[%s3948_s6 + $0x2a8] ss:$28 sps:$4 sm:$0xff]  }
  0x25   :  { %1857 = vmatpush1.bf16.msra.mxu1 %v2670_v35  ;;  %v2711_v35 = vld [vmem:[%s3948_s6 + $0x2e4] ss:$28 sps:$4 sm:$0xff]  }
  0x26   :  { %1858 = vmatprep.subr.bf16.mxu1 %v2671_v36  ;;  %v2709_v36 = vld [vmem:[%s3948_s6 + $0x2e0] ss:$28 sps:$4 sm:$0xff]  }
  0x29   :  { %1859 = vmatpush1.bf16.msra.mxu1 %v2676_v37  ;;  %v2713_v37 = vld [vmem:[%s3948_s6 + $0x314] ss:$28 sps:$4 sm:$0xff]  }
  0x2a   :  { %1860 = vmatprep.subr.bf16.mxu1 %v2677_v38  ;;  %v2717_v38 = vld [vmem:[%s3948_s6 + $0x31c] ss:$28 sps:$4 sm:$0xff]  }
  0x2d   :  { %1861 = vmatpush1.bf16.msra.mxu1 %v2682_v39  ;;  %v2718_v39 = vld [vmem:[%s3948_s6 + $0x310] ss:$28 sps:$4 sm:$0xff]  }
  0x2e   :  { %1862 = vmatprep.subr.bf16.mxu1 %v2683_v40  ;;  %v2715_v40 = vld [vmem:[%s3948_s6 + $0x318] ss:$28 sps:$4 sm:$0xff]  }
  0x31   :  { %1863 = vmatpush1.bf16.msra.mxu1 %v2688_v41  ;;  %v2719_v41 = vld [vmem:[%s3948_s6 + $0x34c] ss:$28 sps:$4 sm:$0xff]  }
  0x32   :  { %1864 = vmatprep.subr.bf16.mxu1 %v2689_v42  ;;  %v2723_v42 = vld [vmem:[%s3948_s6 + $0x354] ss:$28 sps:$4 sm:$0xff]  }
  0x35   :  { %1865 = vmatpush1.bf16.msra.mxu1 %v2694_v43  ;;  %v2724_v43 = vld [vmem:[%s3948_s6 + $0x348] ss:$28 sps:$4 sm:$0xff]  }
  0x36   :  { %1866 = vmatprep.subr.bf16.mxu1 %v2695_v44  ;;  %v2721_v44 = vld [vmem:[%s3948_s6 + $0x350] ss:$28 sps:$4 sm:$0xff]  }
  0x39   :  { %1867 = vmatpush1.bf16.msra.mxu1 %v2700_v45  ;;  %v2727_v45 = vld [vmem:[%s3948_s6 + $0x384] ss:$28 sps:$4 sm:$0xff]  }
  0x3a   :  { %1868 = vmatprep.subr.bf16.mxu1 %v2701_v46  ;;  %v2730_v46 = vld [vmem:[%s3948_s6 + $0x38c] ss:$28 sps:$4 sm:$0xff]  }
  0x3d   :  { %1869 = vmatpush1.bf16.msra.mxu1 %v2706_v47  ;;  %v129_v47 = vlaneseq }
  0x3e   :  { %1870 = vmatprep.subr.bf16.mxu1 %v2707_v48 }
  0x3f   :  { %v3335_v48 = vshrl.u32 %v129_v47, 7  ;;  %v2787_v47 = vld [vmem:[%s3948_s6 + $0x5b4] ss:$28 sps:$4 sm:$0xff]  }
  0x41   :  { %1871 = vmatpush1.bf16.msra.mxu1 %v2712_v49  ;;  %v131_v49 = vsub.s32 0, %v3335_v48 }
  0x42   :  { %1872 = vmatprep.subr.bf16.mxu1 %v2713_v37  ;;  %v2775_v37 = vld [vmem:[%s3948_s6 + $0x544] ss:$28 sps:$4 sm:$0xff]  }
  0x45   :  { %1873 = vmatpush1.bf16.msra.mxu1 %v2718_v39 }
  0x46   :  { %1874 = vmatprep.subr.bf16.mxu1 %v2719_v41  ;;  %v2773_v41 = vld [vmem:[%s3948_s6 + $0x540] ss:$28 sps:$4 sm:$0xff]  }
  0x49   :  { %1875 = vmatpush1.bf16.msra.mxu1 %v2724_v43  ;;  %v2781_v43 = vld [vmem:[%s3948_s6 + $0x57c] ss:$28 sps:$4 sm:$0xff]  }
  0x4a   :  { %1885 = vmatprep.subr.bf16.mxu1 %v2727_v45  ;;  %v2779_v45 = vld [vmem:[%s3948_s6 + $0x578] ss:$28 sps:$4 sm:$0xff]  }
  0xd8   :  { %v87_v51 = vpop.f32.mrb[0].mxu0 }
  0xd9   :  { %v88_v52 = vadd.f32 %v2248_v50, %v87_v51  ;;  %v2557_v53 = vpop.f32.mrb[1].mxu0  ;;  %v3341_v50 = vld [vmem:[%s3950_s5] sm:$0xf]  ;;  %v135_v51 = vsub.s32 1, %v3335_v48 }
  0xda   :  { %v90_v54 = vpop.f32.mrb[2].mxu0 }
  0xdb   :  { %v93_v56 = vmax.f32 %v88_v52, 0.0  ;;  %v2558_v57 = vpop.f32.mrb[3].mxu0  ;;  %v132_v52 = vrot.slane %v3341_v50, %v131_v49  ;;  %v136_v53 = vrot.slane %v3341_v50, %v135_v51 }
  0xdd   :  { %v94_v59 = vpack.c.bf16 %v93_v56, %v93_v56 }
  0xdf   :  { %342 = vmatmul.mubr.bf16.vlgmr.msra.gmra.mrb[4].mxu0 %v94_v59 }
  0xe0   :  { %351 = vmatpush1.bf16.msra.mxu0 %v2605_v55  ;;  %382 = vmatprep.mubr.bf16.mxu0 %v2979_v21  ;;  %v2669_v21 = vld [vmem:[%s3948_s6 + $0x15c] ss:$28 sps:$4 sm:$0xff]  }
  0xe1   :  { %352 = vmatprep.subr.bf16.mxu0 %v2610_v58 }
  0xe4   :  { %353 = vmatpush1.bf16.msra.mxu0 %v2608_v60 }
  0xe5   :  { %354 = vmatprep.subr.bf16.mxu0 %v2613_v61 }
  0xe8   :  { %355 = vmatpush1.bf16.msra.mxu0 %v2611_v62 }
  0xe9   :  { %356 = vmatprep.subr.bf16.mxu0 %v2616_v63  ;;  %v2725_v63 = vld [vmem:[%s3948_s6 + $0x380] ss:$28 sps:$4 sm:$0xff]  }
  0xec   :  { %357 = vmatpush1.bf16.msra.mxu0 %v2614_v0  ;;  %v2728_v0 = vld [vmem:[%s3948_s6 + $0x388] ss:$28 sps:$4 sm:$0xff]  }
  0xed   :  { %358 = vmatprep.subr.bf16.mxu0 %v2619_v1 }
  0xf0   :  { %359 = vmatpush1.bf16.msra.mxu0 %v2617_v2  ;;  %v2733_v2 = vld [vmem:[%s3948_s6 + $0x3bc] ss:$28 sps:$4 sm:$0xff]  }
  0xf1   :  { %360 = vmatprep.subr.bf16.mxu0 %v2622_v3  ;;  %v2736_v3 = vld [vmem:[%s3948_s6 + $0x3c4] ss:$28 sps:$4 sm:$0xff]  }
  0xf4   :  { %361 = vmatpush1.bf16.msra.mxu0 %v2620_v4  ;;  %v2731_v4 = vld [vmem:[%s3948_s6 + $0x3b8] ss:$28 sps:$4 sm:$0xff]  }
  0xf5   :  { %362 = vmatprep.subr.bf16.mxu0 %v2625_v5  ;;  %v2734_v5 = vld [vmem:[%s3948_s6 + $0x3c0] ss:$28 sps:$4 sm:$0xff]  }
  0xf8   :  { %363 = vmatpush1.bf16.msra.mxu0 %v2623_v6  ;;  %v2739_v6 = vld [vmem:[%s3948_s6 + $0x3f4] ss:$28 sps:$4 sm:$0xff]  }
  0xf9   :  { %364 = vmatprep.subr.bf16.mxu0 %v2628_v7  ;;  %v2742_v7 = vld [vmem:[%s3948_s6 + $0x3fc] ss:$28 sps:$4 sm:$0xff]  }
  0xfc   :  { %365 = vmatpush1.bf16.msra.mxu0 %v2626_v8  ;;  %v2737_v8 = vld [vmem:[%s3948_s6 + $0x3f0] ss:$28 sps:$4 sm:$0xff]  }
  0xfd   :  { %1926 = vmatprep.subr.bf16.mxu0 %v2633_v9  ;;  %v2740_v9 = vld [vmem:[%s3948_s6 + $0x3f8] ss:$28 sps:$4 sm:$0xff]  }
  0xff   :  { %383 = vmatmul.mubr.bf16.vlgmr.msra.gmra.mrb[8].mxu0 %v94_v59 }
 0x100   :  { %1927 = vmatpush1.bf16.msra.mxu0 %v2631_v10  ;;  %v2745_v10 = vld [vmem:[%s3948_s6 + $0x42c] ss:$28 sps:$4 sm:$0xff]  }
 0x101   :  { %1928 = vmatprep.subr.bf16.mxu0 %v2639_v11  ;;  %v2748_v11 = vld [vmem:[%s3948_s6 + $0x434] ss:$28 sps:$4 sm:$0xff]  }
 0x104   :  { %1929 = vmatpush1.bf16.msra.mxu0 %v2637_v12  ;;  %v2743_v12 = vld [vmem:[%s3948_s6 + $0x428] ss:$28 sps:$4 sm:$0xff]  }
 0x105   :  { %1930 = vmatprep.subr.bf16.mxu0 %v2645_v13  ;;  %v2746_v13 = vld [vmem:[%s3948_s6 + $0x430] ss:$28 sps:$4 sm:$0xff]  }
 0x108   :  { %1931 = vmatpush1.bf16.msra.mxu0 %v2643_v14  ;;  %v2751_v14 = vld [vmem:[%s3948_s6 + $0x464] ss:$28 sps:$4 sm:$0xff]  }
 0x109   :  { %1932 = vmatprep.subr.bf16.mxu0 %v2651_v15  ;;  %v2754_v15 = vld [vmem:[%s3948_s6 + $0x46c] ss:$28 sps:$4 sm:$0xff]  }
 0x10c   :  { %1933 = vmatpush1.bf16.msra.mxu0 %v2649_v16  ;;  %v2749_v16 = vld [vmem:[%s3948_s6 + $0x460] ss:$28 sps:$4 sm:$0xff]  }
 0x10d   :  { %1934 = vmatprep.subr.bf16.mxu0 %v2657_v17  ;;  %v2752_v17 = vld [vmem:[%s3948_s6 + $0x468] ss:$28 sps:$4 sm:$0xff]  }
 0x110   :  { %1935 = vmatpush1.bf16.msra.mxu0 %v2655_v18  ;;  %v2757_v18 = vld [vmem:[%s3948_s6 + $0x49c] ss:$28 sps:$4 sm:$0xff]  }
 0x111   :  { %1936 = vmatprep.subr.bf16.mxu0 %v2663_v19  ;;  %v2760_v19 = vld [vmem:[%s3948_s6 + $0x4a4] ss:$28 sps:$4 sm:$0xff]  }
 0x114   :  { %1937 = vmatpush1.bf16.msra.mxu0 %v2661_v20  ;;  %v2755_v20 = vld [vmem:[%s3948_s6 + $0x498] ss:$28 sps:$4 sm:$0xff]  }
 0x115   :  { %1938 = vmatprep.subr.bf16.mxu0 %v2669_v21  ;;  %v2758_v21 = vld [vmem:[%s3948_s6 + $0x4a0] ss:$28 sps:$4 sm:$0xff]  }
 0x118   :  { %1939 = vmatpush1.bf16.msra.mxu0 %v2667_v22  ;;  %v143_v22 = vsub.s32 3, %v3335_v48 }
 0x119   :  { %1940 = vmatprep.subr.bf16.mxu0 %v2675_v23  ;;  %v2763_v23 = vld [vmem:[%s3948_s6 + $0x4d4] ss:$28 sps:$4 sm:$0xff]  }
 0x11c   :  { %1941 = vmatpush1.bf16.msra.mxu0 %v2673_v24  ;;  %v2766_v24 = vld [vmem:[%s3948_s6 + $0x4dc] ss:$28 sps:$4 sm:$0xff]  }
 0x11d   :  { %1942 = vmatprep.subr.bf16.mxu0 %v2681_v25  ;;  %v144_v25 = vrot.slane %v3341_v50, %v143_v22 }
 0x120   :  { %1943 = vmatpush1.bf16.msra.mxu0 %v2679_v26  ;;  %v2761_v26 = vld [vmem:[%s3948_s6 + $0x4d0] ss:$28 sps:$4 sm:$0xff]  }
 0x121   :  { %1944 = vmatprep.subr.bf16.mxu0 %v2687_v27  ;;  %v2764_v27 = vld [vmem:[%s3948_s6 + $0x4d8] ss:$28 sps:$4 sm:$0xff]  }
 0x124   :  { %1945 = vmatpush1.bf16.msra.mxu0 %v2685_v28  ;;  %v2769_v28 = vld [vmem:[%s3948_s6 + $0x50c] ss:$28 sps:$4 sm:$0xff]  }
 0x125   :  { %1946 = vmatprep.subr.bf16.mxu0 %v2693_v29  ;;  %v2772_v29 = vld [vmem:[%s3948_s6 + $0x514] ss:$28 sps:$4 sm:$0xff]  }
 0x128   :  { %1947 = vmatpush1.bf16.msra.mxu0 %v2691_v30 }
 0x129   :  { %1948 = vmatprep.subr.bf16.mxu0 %v2699_v31 }
 0x12c   :  { %1949 = vmatpush1.bf16.msra.mxu0 %v2697_v32 }
 0x12d   :  { %1950 = vmatprep.subr.bf16.mxu0 %v2705_v33 }
 0x130   :  { %1951 = vmatpush1.bf16.msra.mxu0 %v2703_v34  ;;  %v2767_v34 = vld [vmem:[%s3948_s6 + $0x508] ss:$28 sps:$4 sm:$0xff]  }
 0x131   :  { %1952 = vmatprep.subr.bf16.mxu0 %v2711_v35  ;;  %v2770_v35 = vld [vmem:[%s3948_s6 + $0x510] ss:$28 sps:$4 sm:$0xff]  }
 0x134   :  { %1953 = vmatpush1.bf16.msra.mxu0 %v2709_v36 }
 0x135   :  { %1954 = vmatprep.subr.bf16.mxu0 %v2717_v38  ;;  %v2778_v38 = vld [vmem:[%s3948_s6 + $0x54c] ss:$28 sps:$4 sm:$0xff]  }
 0x138   :  { %1955 = vmatpush1.bf16.msra.mxu0 %v2715_v40 }
 0x139   :  { %1956 = vmatprep.subr.bf16.mxu0 %v2723_v42  ;;  %v2776_v42 = vld [vmem:[%s3948_s6 + $0x548] ss:$28 sps:$4 sm:$0xff]  }
 0x13c   :  { %1957 = vmatpush1.bf16.msra.mxu0 %v2721_v44  ;;  %v2784_v44 = vld [vmem:[%s3948_s6 + $0x584] ss:$28 sps:$4 sm:$0xff]  }
 0x13d   :  { %1967 = vmatprep.subr.bf16.mxu0 %v2730_v46  ;;  %v2782_v46 = vld [vmem:[%s3948_s6 + $0x580] ss:$28 sps:$4 sm:$0xff]  }
 0x1b2   :  { %v343_v54 = vpop.f32.mrb[4].mxu0 }
 0x1b3   :  { %v344_v55 = vadd.f32 %v343_v54, %v132_v52  ;;  %v345_v56 = vpop.f32.mrb[5].mxu0  ;;  %v2790_v52 = vld [vmem:[%s3948_s6 + $0x5bc] ss:$28 sps:$4 sm:$0xff]  }
 0x1b4   :  { %v346_v57 = vadd.f32 %v345_v56, %v136_v53  ;;  %v347_v58 = vpop.f32.mrb[6].mxu0  ;;  %v2785_v53 = vld [vmem:[%s3948_s6 + $0x5b0] ss:$28 sps:$4 sm:$0xff]   ;;  %v2788_v54 = vld [vmem:[%s3948_s6 + $0x5b8] ss:$28 sps:$4 sm:$0xff]  }
 0x1b5   :  { %v391_v59 = vmax.f32 %v344_v55, 0.0  ;;  %v348_v60 = vpop.f32.mrb[7].mxu0  ;;  %v2793_v55 = vld [vmem:[%s3948_s6 + $0x5ec] ss:$28 sps:$4 sm:$0xff]   ;;  %v2796_v56 = vld [vmem:[%s3948_s6 + $0x5f4] ss:$28 sps:$4 sm:$0xff]  }
 0x1b6   :  { %v392_v61 = vmax.f32 %v346_v57, 0.0  ;;  %v2791_v57 = vld [vmem:[%s3948_s6 + $0x5e8] ss:$28 sps:$4 sm:$0xff]   ;;  %v2794_v58 = vld [vmem:[%s3948_s6 + $0x5f0] ss:$28 sps:$4 sm:$0xff]  }
 0x1b7   :  { %v3358_v1 = vpack.c.bf16 %v391_v59, %v391_v59  ;;  %v2799_v59 = vld [vmem:[%s3948_s6 + $0x624] ss:$28 sps:$4 sm:$0xff]   ;;  %v2802_v60 = vld [vmem:[%s3948_s6 + $0x62c] ss:$28 sps:$4 sm:$0xff]  }
 0x1b8   :  { %v3350_v62 = vpack.c.bf16 %v392_v61, %v392_v61  ;;  %v2797_v61 = vld [vmem:[%s3948_s6 + $0x620] ss:$28 sps:$4 sm:$0xff]  }
 0x1ba   :  { %1876 = vmatprep.mubr.bf16.mxu1 %v3350_v62  ;;  %1958 = vmatprep.mubr.bf16.mxu0 %v3350_v62 }
 0x1bb   :  { %1877 = vmatmul.mubr.bf16.vlgmr.msra.gmra.mrb[0].mxu1 %v3358_v1  ;;  %1959 = vmatmul.mubr.bf16.vlgmr.msra.gmra.mrb[12].mxu0 %v3358_v1 }
 0x1bc   :  { %1886 = vmatpush1.bf16.msra.mxu1 %v2725_v63  ;;  %1968 = vmatpush1.bf16.msra.mxu0 %v2728_v0  ;;  %v2800_v63 = vld [vmem:[%s3948_s6 + $0x628] ss:$28 sps:$4 sm:$0xff]   ;;  %v139_v0 = vsub.s32 2, %v3335_v48 }
 0x1bd   :  { %1887 = vmatprep.subr.bf16.mxu1 %v2733_v2  ;;  %1969 = vmatprep.subr.bf16.mxu0 %v2736_v3  ;;  %v2805_v2 = vld [vmem:[%s3948_s6 + $0x65c] ss:$28 sps:$4 sm:$0xff]   ;;  %v2808_v3 = vld [vmem:[%s3948_s6 + $0x664] ss:$28 sps:$4 sm:$0xff]  }
 0x1c0   :  { %1888 = vmatpush1.bf16.msra.mxu1 %v2731_v4  ;;  %1970 = vmatpush1.bf16.msra.mxu0 %v2734_v5  ;;  %v2803_v4 = vld [vmem:[%s3948_s6 + $0x658] ss:$28 sps:$4 sm:$0xff]   ;;  %v2806_v5 = vld [vmem:[%s3948_s6 + $0x660] ss:$28 sps:$4 sm:$0xff]  }
 0x1c1   :  { %1889 = vmatprep.subr.bf16.mxu1 %v2739_v6  ;;  %1971 = vmatprep.subr.bf16.mxu0 %v2742_v7  ;;  %v140_v6 = vrot.slane %v3341_v50, %v139_v0  ;;  %v2811_v7 = vld [vmem:[%s3948_s6 + $0x694] ss:$28 sps:$4 sm:$0xff]  }
 0x1c2   :  { %v2812_v50 = vld [vmem:[%s3948_s6 + $0x698] ss:$28 sps:$4 sm:$0xff]  }
 0x1c4   :  { %1890 = vmatpush1.bf16.msra.mxu1 %v2737_v8  ;;  %1972 = vmatpush1.bf16.msra.mxu0 %v2740_v9  ;;  %v2814_v8 = vld [vmem:[%s3948_s6 + $0x69c] ss:$28 sps:$4 sm:$0xff]   ;;  %v2809_v9 = vld [vmem:[%s3948_s6 + $0x690] ss:$28 sps:$4 sm:$0xff]  }
 0x1c5   :  { %1891 = vmatprep.subr.bf16.mxu1 %v2745_v10  ;;  %1973 = vmatprep.subr.bf16.mxu0 %v2748_v11  ;;  %v2817_v11 = vld [vmem:[%s3948_s6 + $0x6cc] ss:$28 sps:$4 sm:$0xff]  }
 0x1c8   :  { %1892 = vmatpush1.bf16.msra.mxu1 %v2743_v12  ;;  %1974 = vmatpush1.bf16.msra.mxu0 %v2746_v13  ;;  %v2820_v12 = vld [vmem:[%s3948_s6 + $0x6d4] ss:$28 sps:$4 sm:$0xff]   ;;  %v2815_v13 = vld [vmem:[%s3948_s6 + $0x6c8] ss:$28 sps:$4 sm:$0xff]  }
 0x1c9   :  { %1893 = vmatprep.subr.bf16.mxu1 %v2751_v14  ;;  %1975 = vmatprep.subr.bf16.mxu0 %v2754_v15  ;;  %v2818_v14 = vld [vmem:[%s3948_s6 + $0x6d0] ss:$28 sps:$4 sm:$0xff]  }
 0x1cc   :  { %1894 = vmatpush1.bf16.msra.mxu1 %v2749_v16  ;;  %1976 = vmatpush1.bf16.msra.mxu0 %v2752_v17  ;;  %v2823_v16 = vld [vmem:[%s3948_s6 + $0x14] ss:$28 sps:$4 sm:$0xff]  }
 0x1cd   :  { %1895 = vmatprep.subr.bf16.mxu1 %v2757_v18  ;;  %1977 = vmatprep.subr.bf16.mxu0 %v2760_v19  ;;  %v2824_v17 = vld [vmem:[%s3948_s6 + $0x1d8] ss:$28 sps:$4 sm:$0xff]   ;;  %v2821_v18 = vld [vmem:[%s3948_s6 + $0x10] ss:$28 sps:$4 sm:$0xff]  }
 0x1d0   :  { %1896 = vmatpush1.bf16.msra.mxu1 %v2755_v20  ;;  %1978 = vmatpush1.bf16.msra.mxu0 %v2758_v21  ;;  %v2825_v20 = vld [vmem:[%s3948_s6 + $0x18] ss:$28 sps:$4 sm:$0xff]   ;;  %v2828_v21 = vld [vmem:[%s3948_s6 + $0x4c] ss:$28 sps:$4 sm:$0xff]  }
 0x1d1   :  { %1897 = vmatprep.subr.bf16.mxu1 %v2763_v23  ;;  %1979 = vmatprep.subr.bf16.mxu0 %v2766_v24  ;;  %v2829_v23 = vld [vmem:[%s3948_s6 + $0x210] ss:$28 sps:$4 sm:$0xff]   ;;  %v2826_v24 = vld [vmem:[%s3948_s6 + $0x48] ss:$28 sps:$4 sm:$0xff]  }
 0x1d2   :  { %v3446_v30 = vpop.f32.mrb[8].mxu0 }
 0x1d3   :  { %v386_v31 = vpop.f32.mrb[9].mxu0  ;;  %v385_v10 = vadd.f32 %v3446_v30, %v140_v6  ;;  %v2839_v30 = vld [vmem:[%s3948_s6 + $0x280] ss:$28 sps:$4 sm:$0xff]  }
 0x1d4   :  { %v387_v32 = vadd.f32 %v386_v31, %v144_v25  ;;  %v388_v33 = vpop.f32.mrb[10].mxu0  ;;  %1898 = vmatpush1.bf16.msra.mxu1 %v2761_v26  ;;  %1980 = vmatpush1.bf16.msra.mxu0 %v2764_v27  ;;  %v2830_v25 = vld [vmem:[%s3948_s6 + $0x50] ss:$28 sps:$4 sm:$0xff]   ;;  %v2833_v26 = vld [vmem:[%s3948_s6 + $0x84] ss:$28 sps:$4 sm:$0xff]  }
 0x1d5   :  { %v389_v36 = vpop.f32.mrb[11].mxu0  ;;  %1899 = vmatprep.subr.bf16.mxu1 %v2769_v28  ;;  %1981 = vmatprep.subr.bf16.mxu0 %v2772_v29  ;;  %v393_v15 = vmax.f32 %v385_v10, 0.0  ;;  %v2834_v27 = vld [vmem:[%s3948_s6 + $0x248] ss:$28 sps:$4 sm:$0xff]   ;;  %v2831_v28 = vld [vmem:[%s3948_s6 + $0x80] ss:$28 sps:$4 sm:$0xff]  }
 0x1d6   :  { %v394_v39 = vmax.f32 %v387_v32, 0.0  ;;  %v2838_v29 = vld [vmem:[%s3948_s6 + $0xbc] ss:$28 sps:$4 sm:$0xff]   ;;  %v2843_v33 = vld [vmem:[%s3948_s6 + $0xf4] ss:$28 sps:$4 sm:$0xff]  }
 0x1d7   :  { %v3568_v19 = vpack.c.bf16 %v393_v15, %v393_v15  ;;  %v2836_v31 = vld [vmem:[%s3948_s6 + $0xb8] ss:$28 sps:$4 sm:$0xff]   ;;  %v2840_v32 = vld [vmem:[%s3948_s6 + $0xc0] ss:$28 sps:$4 sm:$0xff]   ;;  %v2881_v10 = vld [vmem:[%s3948_s6 + $0x2b0] ss:$28 sps:$4 sm:$0xff]  }
 0x1d8   :  { %v3460_v40 = vpack.c.bf16 %v394_v39, %v394_v39  ;;  %1900 = vmatpush1.bf16.msra.mxu1 %v2767_v34  ;;  %1982 = vmatpush1.bf16.msra.mxu0 %v2770_v35  ;;  %v2844_v34 = vld [vmem:[%s3948_s6 + $0x2b8] ss:$28 sps:$4 sm:$0xff]   ;;  %v2841_v35 = vld [vmem:[%s3948_s6 + $0xf0] ss:$28 sps:$4 sm:$0xff]   ;;  %v2846_v39 = vld [vmem:[%s3948_s6 + $0x128] ss:$28 sps:$4 sm:$0xff]  }
 0x1d9   :  { %1901 = vmatprep.subr.bf16.mxu1 %v2775_v37  ;;  %1983 = vmatprep.subr.bf16.mxu0 %v2778_v38  ;;  %v2845_v36 = vld [vmem:[%s3948_s6 + $0xf8] ss:$28 sps:$4 sm:$0xff]   ;;  %v2848_v37 = vld [vmem:[%s3948_s6 + $0x12c] ss:$28 sps:$4 sm:$0xff]   ;;  %v2879_v6 = vld [vmem:[%s3948_s6 + $0x600] ss:$28 sps:$4 sm:$0xff]  }
 0x1da   :  { %1917 = vmatprep.mubr.bf16.mxu1 %v3460_v40  ;;  %1999 = vmatprep.mubr.bf16.mxu0 %v3460_v40  ;;  %v2849_v38 = vld [vmem:[%s3948_s6 + $0x2f0] ss:$28 sps:$4 sm:$0xff]  }
 0x1db   :  { %v2890_v15 = vld [vmem:[%s3948_s6 + $0x4b0] ss:$28 sps:$4 sm:$0xff]  }
 0x1dc   :  { %1902 = vmatpush1.bf16.msra.mxu1 %v2773_v41  ;;  %1984 = vmatpush1.bf16.msra.mxu0 %v2776_v42  ;;  %v2850_v41 = vld [vmem:[%s3948_s6 + $0x130] ss:$28 sps:$4 sm:$0xff]   ;;  %v2853_v42 = vld [vmem:[%s3948_s6 + $0x164] ss:$28 sps:$4 sm:$0xff]  }
 0x1dd   :  { %1903 = vmatprep.subr.bf16.mxu1 %v2781_v43  ;;  %1985 = vmatprep.subr.bf16.mxu0 %v2784_v44  ;;  %v2854_v43 = vld [vmem:[%s3948_s6 + $0x328] ss:$28 sps:$4 sm:$0xff]   ;;  %v2851_v44 = vld [vmem:[%s3948_s6 + $0x160] ss:$28 sps:$4 sm:$0xff]  }
 0x1e0   :  { %1904 = vmatpush1.bf16.msra.mxu1 %v2779_v45  ;;  %1986 = vmatpush1.bf16.msra.mxu0 %v2782_v46  ;;  %v2855_v45 = vld [vmem:[%s3948_s6 + $0x168] ss:$28 sps:$4 sm:$0xff]   ;;  %v2858_v46 = vld [vmem:[%s3948_s6 + $0x19c] ss:$28 sps:$4 sm:$0xff]  }
 0x1e1   :  { %1905 = vmatprep.subr.bf16.mxu1 %v2787_v47  ;;  %1987 = vmatprep.subr.bf16.mxu0 %v2790_v52  ;;  %v2859_v47 = vld [vmem:[%s3948_s6 + $0x360] ss:$28 sps:$4 sm:$0xff]   ;;  %v2856_v52 = vld [vmem:[%s3948_s6 + $0x198] ss:$28 sps:$4 sm:$0xff]  }
 0x1e4   :  { %1906 = vmatpush1.bf16.msra.mxu1 %v2785_v53  ;;  %1988 = vmatpush1.bf16.msra.mxu0 %v2788_v54  ;;  %v2860_v53 = vld [vmem:[%s3948_s6 + $0x1a0] ss:$28 sps:$4 sm:$0xff]   ;;  %v2863_v54 = vld [vmem:[%s3948_s6 + $0x1d4] ss:$28 sps:$4 sm:$0xff]  }
 0x1e5   :  { %1907 = vmatprep.subr.bf16.mxu1 %v2793_v55  ;;  %1989 = vmatprep.subr.bf16.mxu0 %v2796_v56  ;;  %v2864_v55 = vld [vmem:[%s3948_s6 + $0x558] ss:$28 sps:$4 sm:$0xff]   ;;  %v2861_v56 = vld [vmem:[%s3948_s6 + $0x1d0] ss:$28 sps:$4 sm:$0xff]  }
 0x1e8   :  { %1908 = vmatpush1.bf16.msra.mxu1 %v2791_v57  ;;  %1990 = vmatpush1.bf16.msra.mxu0 %v2794_v58  ;;  %v2865_v57 = vld [vmem:[%s3948_s6 + $0x398] ss:$28 sps:$4 sm:$0xff]   ;;  %v2868_v58 = vld [vmem:[%s3948_s6 + $0x20c] ss:$28 sps:$4 sm:$0xff]  }
 0x1e9   :  { %1909 = vmatprep.subr.bf16.mxu1 %v2799_v59  ;;  %1991 = vmatprep.subr.bf16.mxu0 %v2802_v60  ;;  %v2869_v59 = vld [vmem:[%s3948_s6 + $0x590] ss:$28 sps:$4 sm:$0xff]   ;;  %v2866_v60 = vld [vmem:[%s3948_s6 + $0x208] ss:$28 sps:$4 sm:$0xff]  }
 0x1ec   :  { %1910 = vmatpush1.bf16.msra.mxu1 %v2797_v61  ;;  %1992 = vmatpush1.bf16.msra.mxu0 %v2800_v63  ;;  %v2870_v61 = vld [vmem:[%s3948_s6 + $0x3d0] ss:$28 sps:$4 sm:$0xff]   ;;  %v2873_v63 = vld [vmem:[%s3948_s6 + $0x244] ss:$28 sps:$4 sm:$0xff]  }
 0x1ed   :  { %1911 = vmatprep.subr.bf16.mxu1 %v2805_v2  ;;  %1993 = vmatprep.subr.bf16.mxu0 %v2808_v3  ;;  %v2874_v2 = vld [vmem:[%s3948_s6 + $0x5c8] ss:$28 sps:$4 sm:$0xff]   ;;  %v2871_v3 = vld [vmem:[%s3948_s6 + $0x240] ss:$28 sps:$4 sm:$0xff]  }
 0x1f0   :  { %1912 = vmatpush1.bf16.msra.mxu1 %v2803_v4  ;;  %1994 = vmatpush1.bf16.msra.mxu0 %v2806_v5  ;;  %v2875_v4 = vld [vmem:[%s3948_s6 + $0x408] ss:$28 sps:$4 sm:$0xff]   ;;  %v2878_v5 = vld [vmem:[%s3948_s6 + $0x27c] ss:$28 sps:$4 sm:$0xff]  }
 0x1f1   :  { %1913 = vmatprep.subr.bf16.mxu1 %v2811_v7  ;;  %1995 = vmatprep.subr.bf16.mxu0 %v2814_v8  ;;  %v2876_v7 = vld [vmem:[%s3948_s6 + $0x278] ss:$28 sps:$4 sm:$0xff]   ;;  %v2880_v8 = vld [vmem:[%s3948_s6 + $0x440] ss:$28 sps:$4 sm:$0xff]  }
 0x1f4   :  { %1914 = vmatpush1.bf16.msra.mxu1 %v2809_v9  ;;  %1996 = vmatpush1.bf16.msra.mxu0 %v2812_v50  ;;  %v2883_v9 = vld [vmem:[%s3948_s6 + $0x2b4] ss:$28 sps:$4 sm:$0xff]  }
 0x1f5   :  { %1915 = vmatprep.subr.bf16.mxu1 %v2817_v11  ;;  %1997 = vmatprep.subr.bf16.mxu0 %v2820_v12  ;;  %v2884_v50 = vld [vmem:[%s3948_s6 + $0x638] ss:$28 sps:$4 sm:$0xff]   ;;  %v2888_v12 = vld [vmem:[%s3948_s6 + $0x2ec] ss:$28 sps:$4 sm:$0xff]  }
 0x1f6   :  { %v2885_v11 = vld [vmem:[%s3948_s6 + $0x478] ss:$28 sps:$4 sm:$0xff]  }
 0x1f8   :  { %1916 = vmatpush1.bf16.msra.mxu1 %v2815_v13  ;;  %1998 = vmatpush1.bf16.msra.mxu0 %v2818_v14  ;;  %v2889_v13 = vld [vmem:[%s3948_s6 + $0x670] ss:$28 sps:$4 sm:$0xff]   ;;  %v2886_v14 = vld [vmem:[%s3948_s6 + $0x2e8] ss:$28 sps:$4 sm:$0xff]  }
 0x1f9   :  { %2008 = vmatprep.subr.bf16.mxu1 %v2823_v16  ;;  %2509 = vmatprep.subr.bf16.mxu0 %v2824_v17  ;;  %v2893_v16 = vld [vmem:[%s3948_s6 + $0x324] ss:$28 sps:$4 sm:$0xff]  }
 0x1fa   :  { %v2894_v17 = vld [vmem:[%s3948_s6 + $0x6a8] ss:$28 sps:$4 sm:$0xff]  }
 0x1fb   :  { %1918 = vmatmul.mubr.bf16.vlgmr.msra.gmra.mrb[0].mxu1 %v3568_v19  ;;  %2000 = vmatmul.mubr.bf16.vlgmr.msra.gmra.mrb[12].mxu0 %v3568_v19 }
 0x1fc   :  { %2009 = vmatpush1.bf16.msra.mxu1 %v2821_v18  ;;  %2040 = vmatprep.mubr.bf16.mxu1 %v3350_v62  ;;  %v2891_v18 = vld [vmem:[%s3948_s6 + $0x320] ss:$28 sps:$4 sm:$0xff]  }
 0x1fd   :  { %2510 = vmatpush3.bf16.msra.mxu0 %v2825_v20  ;;  %2122 = vmatprep.mubr.bf16.mxu0 %v3350_v62  ;;  %v2835_v62 = vld [vmem:[%s3948_s6 + $0x88] ss:$28 sps:$4 sm:$0xff]  }
 0x1fe   :  { %2010 = vmatprep.subr.bf16.mxu1 %v2828_v21  ;;  %2511 = vmatprep.subr.bf16.mxu0 %v2829_v23  ;;  %v2895_v20 = vld [vmem:[%s3948_s6 + $0x4e8] ss:$28 sps:$4 sm:$0xff]   ;;  %v2898_v21 = vld [vmem:[%s3948_s6 + $0x35c] ss:$28 sps:$4 sm:$0xff]  }
 0x1ff   :  { %v2899_v23 = vld [vmem:[%s3948_s6 + $0x6e0] ss:$28 sps:$4 sm:$0xff]  }
 0x200   :  { %2011 = vmatpush1.bf16.msra.mxu1 %v2826_v24  ;;  %v2896_v24 = vld [vmem:[%s3948_s6 + $0x358] ss:$28 sps:$4 sm:$0xff]  }
 0x201   :  { %2512 = vmatpush3.bf16.msra.mxu0 %v2830_v25  ;;  %2012 = vmatprep.subr.bf16.mxu1 %v2833_v26  ;;  %v2900_v25 = vld [vmem:[%s3948_s6 + $0x520] ss:$28 sps:$4 sm:$0xff]   ;;  %v2903_v26 = vld [vmem:[%s3948_s6 + $0x394] ss:$28 sps:$4 sm:$0xff]  }
 0x202   :  { %2513 = vmatprep.subr.bf16.mxu0 %v2834_v27  ;;  %v2901_v27 = vld [vmem:[%s3948_s6 + $0x390] ss:$28 sps:$4 sm:$0xff]  }
 0x204   :  { %2013 = vmatpush1.bf16.msra.mxu1 %v2831_v28  ;;  %v2906_v28 = vld [vmem:[%s3948_s6 + $0x3cc] ss:$28 sps:$4 sm:$0xff]  }
 0x205   :  { %2514 = vmatpush3.bf16.msra.mxu0 %v2835_v62  ;;  %2014 = vmatprep.subr.bf16.mxu1 %v2838_v29  ;;  %v2904_v62 = vld [vmem:[%s3948_s6 + $0x3c8] ss:$28 sps:$4 sm:$0xff]  }
 0x206   :  { %2515 = vmatprep.subr.bf16.mxu0 %v2839_v30  ;;  %v2909_v29 = vld [vmem:[%s3948_s6 + $0x404] ss:$28 sps:$4 sm:$0xff]  }
 0x207   :  { %v2907_v30 = vld [vmem:[%s3948_s6 + $0x400] ss:$28 sps:$4 sm:$0xff]  }
 0x208   :  { %2015 = vmatpush1.bf16.msra.mxu1 %v2836_v31  ;;  %v2915_v31 = vld [vmem:[%s3948_s6 + $0x474] ss:$28 sps:$4 sm:$0xff]  }
 0x209   :  { %2516 = vmatpush3.bf16.msra.mxu0 %v2840_v32  ;;  %2016 = vmatprep.subr.bf16.mxu1 %v2843_v33  ;;  %v2913_v32 = vld [vmem:[%s3948_s6 + $0x470] ss:$28 sps:$4 sm:$0xff]  }
 0x20a   :  { %2517 = vmatprep.subr.bf16.mxu0 %v2844_v34  ;;  %v2918_v33 = vld [vmem:[%s3948_s6 + $0x4ac] ss:$28 sps:$4 sm:$0xff]  }
 0x20b   :  { %v2916_v34 = vld [vmem:[%s3948_s6 + $0x4a8] ss:$28 sps:$4 sm:$0xff]  }
 0x20c   :  { %2017 = vmatpush1.bf16.msra.mxu1 %v2841_v35  ;;  %v2921_v35 = vld [vmem:[%s3948_s6 + $0x4e4] ss:$28 sps:$4 sm:$0xff]  }
 0x20d   :  { %2518 = vmatpush3.bf16.msra.mxu0 %v2845_v36  ;;  %2018 = vmatprep.subr.bf16.mxu1 %v2848_v37  ;;  %v2919_v36 = vld [vmem:[%s3948_s6 + $0x4e0] ss:$28 sps:$4 sm:$0xff]  }
 0x20e   :  { %2519 = vmatprep.subr.bf16.mxu0 %v2849_v38  ;;  %v2924_v37 = vld [vmem:[%s3948_s6 + $0x51c] ss:$28 sps:$4 sm:$0xff]  }
 0x20f   :  { %v2922_v38 = vld [vmem:[%s3948_s6 + $0x518] ss:$28 sps:$4 sm:$0xff]  }
 0x210   :  { %2019 = vmatpush1.bf16.msra.mxu1 %v2846_v39  ;;  %v2927_v39 = vld [vmem:[%s3948_s6 + $0x554] ss:$28 sps:$4 sm:$0xff]  }
 0x211   :  { %2520 = vmatpush3.bf16.msra.mxu0 %v2850_v41  ;;  %2020 = vmatprep.subr.bf16.mxu1 %v2853_v42  ;;  %v2925_v41 = vld [vmem:[%s3948_s6 + $0x550] ss:$28 sps:$4 sm:$0xff]  }
 0x212   :  { %2521 = vmatprep.subr.bf16.mxu0 %v2854_v43  ;;  %v2930_v42 = vld [vmem:[%s3948_s6 + $0x58c] ss:$28 sps:$4 sm:$0xff]  }
 0x213   :  { %v2928_v43 = vld [vmem:[%s3948_s6 + $0x588] ss:$28 sps:$4 sm:$0xff]  }
 0x214   :  { %2021 = vmatpush1.bf16.msra.mxu1 %v2851_v44  ;;  %v2933_v44 = vld [vmem:[%s3948_s6 + $0x5c4] ss:$28 sps:$4 sm:$0xff]  }
 0x215   :  { %2522 = vmatpush3.bf16.msra.mxu0 %v2855_v45  ;;  %2022 = vmatprep.subr.bf16.mxu1 %v2858_v46  ;;  %v2931_v45 = vld [vmem:[%s3948_s6 + $0x5c0] ss:$28 sps:$4 sm:$0xff]  }
 0x216   :  { %2523 = vmatprep.subr.bf16.mxu0 %v2859_v47  ;;  %v2936_v46 = vld [vmem:[%s3948_s6 + $0x5fc] ss:$28 sps:$4 sm:$0xff]  }
 0x217   :  { %v2934_v47 = vld [vmem:[%s3948_s6 + $0x5f8] ss:$28 sps:$4 sm:$0xff]  }
 0x218   :  { %2023 = vmatpush1.bf16.msra.mxu1 %v2856_v52  ;;  %v2939_v52 = vld [vmem:[%s3948_s6 + $0x634] ss:$28 sps:$4 sm:$0xff]  }
 0x219   :  { %2524 = vmatpush3.bf16.msra.mxu0 %v2860_v53  ;;  %2024 = vmatprep.subr.bf16.mxu1 %v2863_v54  ;;  %v2937_v53 = vld [vmem:[%s3948_s6 + $0x630] ss:$28 sps:$4 sm:$0xff]  }
 0x21a   :  { %2531 = vmatprep.subr.bf16.mxu0 %v2864_v55  ;;  %v2942_v54 = vld [vmem:[%s3948_s6 + $0x66c] ss:$28 sps:$4 sm:$0xff]  }
 0x21b   :  { %v2940_v55 = vld [vmem:[%s3948_s6 + $0x668] ss:$28 sps:$4 sm:$0xff]  }
 0x21c   :  { %2123 = vmatmul.mubr.bf16.vlgmr.msra.gmra.mrb[16].mxu0 %v3358_v1  ;;  %2025 = vmatpush1.bf16.msra.mxu1 %v2861_v56  ;;  %v2945_v56 = vld [vmem:[%s3948_s6 + $0x6a4] ss:$28 sps:$4 sm:$0xff]  }
 0x21d   :  { %2532 = vmatpush3.bf16.msra.mxu0 %v2865_v57  ;;  %2162 = vmatprep.mubr.bf16.mxu0 %v3460_v40  ;;  %v2943_v57 = vld [vmem:[%s3948_s6 + $0x6a0] ss:$28 sps:$4 sm:$0xff]  }
 0x21e   :  { %2026 = vmatprep.subr.bf16.mxu1 %v2868_v58  ;;  %2533 = vmatprep.subr.bf16.mxu0 %v2869_v59  ;;  %v2948_v58 = vld [vmem:[%s3948_s6 + $0x6dc] ss:$28 sps:$4 sm:$0xff]  }
 0x21f   :  { %v2946_v59 = vld [vmem:[%s3948_s6 + $0x6d8] ss:$28 sps:$4 sm:$0xff]  }
 0x220   :  { %2027 = vmatpush1.bf16.msra.mxu1 %v2866_v60  ;;  %v3862_v60 = vld [vmem:[%s3951_s7] sm:$0xff] }
 0x221   :  { %2534 = vmatpush3.bf16.msra.mxu0 %v2870_v61  ;;  %2028 = vmatprep.subr.bf16.mxu1 %v2873_v63  ;;  %v660_v61 = vrot.slane %v3862_v60, %v131_v49  ;;  %v668_v63 = vrot.slane %v3862_v60, %v139_v0 }
 0x222   :  { %2535 = vmatprep.subr.bf16.mxu0 %v2874_v2  ;;  %v664_v2 = vrot.slane %v3862_v60, %v135_v51 }
 0x224   :  { %2029 = vmatpush1.bf16.msra.mxu1 %v2871_v3 }
 0x225   :  { %2536 = vmatpush3.bf16.msra.mxu0 %v2875_v4  ;;  %2030 = vmatprep.subr.bf16.mxu1 %v2878_v5 }
 0x226   :  { %2537 = vmatprep.subr.bf16.mxu0 %v2879_v6 }
 0x228   :  { %2031 = vmatpush1.bf16.msra.mxu1 %v2876_v7 }
 0x229   :  { %2538 = vmatpush3.bf16.msra.mxu0 %v2880_v8  ;;  %2032 = vmatprep.subr.bf16.mxu1 %v2883_v9 }
 0x22a   :  { %2539 = vmatprep.subr.bf16.mxu0 %v2884_v50 }
 0x22c   :  { %2033 = vmatpush1.bf16.msra.mxu1 %v2881_v10 }
 0x22d   :  { %2540 = vmatpush3.bf16.msra.mxu0 %v2885_v11  ;;  %2034 = vmatprep.subr.bf16.mxu1 %v2888_v12 }
 0x22e   :  { %2541 = vmatprep.subr.bf16.mxu0 %v2889_v13 }
 0x230   :  { %2035 = vmatpush1.bf16.msra.mxu1 %v2886_v14 }
 0x231   :  { %2542 = vmatpush3.bf16.msra.mxu0 %v2890_v15  ;;  %2036 = vmatprep.subr.bf16.mxu1 %v2893_v16 }
 0x232   :  { %2543 = vmatprep.subr.bf16.mxu0 %v2894_v17 }
 0x234   :  { %2037 = vmatpush1.bf16.msra.mxu1 %v2891_v18 }
 0x235   :  { %2544 = vmatpush3.bf16.msra.mxu0 %v2895_v20  ;;  %2038 = vmatprep.subr.bf16.mxu1 %v2898_v21 }
 0x236   :  { %2545 = vmatprep.subr.bf16.mxu0 %v2899_v23 }
 0x238   :  { %2039 = vmatpush1.bf16.msra.mxu1 %v2896_v24 }
 0x239   :  { %2546 = vmatpush3.bf16.msra.mxu0 %v2900_v25  ;;  %2049 = vmatprep.subr.bf16.mxu1 %v2903_v26 }
 0x23b   :  { %2041 = vmatmul.mubr.bf16.vlgmr.msra.gmra.mrb[4].mxu1 %v3358_v1  ;;  %v2912_v1 = vld [vmem:[%s3948_s6 + $0x43c] ss:$28 sps:$4 sm:$0xff]  }
 0x23c   :  { %2163 = vmatmul.mubr.bf16.vlgmr.msra.gmra.mrb[20].mxu0 %v3568_v19  ;;  %2050 = vmatpush1.bf16.msra.mxu1 %v2901_v27 }
 0x23d   :  { %2081 = vmatprep.mubr.bf16.mxu1 %v3460_v40  ;;  %2051 = vmatprep.subr.bf16.mxu1 %v2906_v28  ;;  %v2910_v40 = vld [vmem:[%s3948_s6 + $0x438] ss:$28 sps:$4 sm:$0xff]   ;;  %v2212_v28 = vld [vmem:[%s3952_s1] sm:$0xff] }
 0x240   :  { %2052 = vmatpush1.bf16.msra.mxu1 %v2904_v62  ;;  %v2214_v62 = vld [vmem:[%s3952_s1 + $0x10] sm:$0xff] }
 0x241   :  { %2053 = vmatprep.subr.bf16.mxu1 %v2909_v29 }
 0x244   :  { %2054 = vmatpush1.bf16.msra.mxu1 %v2907_v30  ;;  %v2213_v30 = vld [vmem:[%s3952_s1 + $0x8] sm:$0xff] }
 0x245   :  { %2055 = vmatprep.subr.bf16.mxu1 %v2912_v1 }
 0x248   :  { %2056 = vmatpush1.bf16.msra.mxu1 %v2910_v40 }
 0x249   :  { %2057 = vmatprep.subr.bf16.mxu1 %v2915_v31  ;;  %v2215_v31 = vld [vmem:[%s3952_s1 + $0x18] sm:$0xff] }
 0x24c   :  { %2058 = vmatpush1.bf16.msra.mxu1 %v2913_v32 }
 0x24d   :  { %2059 = vmatprep.subr.bf16.mxu1 %v2918_v33 }
 0x250   :  { %2060 = vmatpush1.bf16.msra.mxu1 %v2916_v34 }
 0x251   :  { %2061 = vmatprep.subr.bf16.mxu1 %v2921_v35 }
 0x254   :  { %2062 = vmatpush1.bf16.msra.mxu1 %v2919_v36 }
 0x255   :  { %2063 = vmatprep.subr.bf16.mxu1 %v2924_v37 }
 0x258   :  { %2064 = vmatpush1.bf16.msra.mxu1 %v2922_v38 }
 0x259   :  { %2065 = vmatprep.subr.bf16.mxu1 %v2927_v39 }
 0x25c   :  { %2066 = vmatpush1.bf16.msra.mxu1 %v2925_v41 }
 0x25d   :  { %2067 = vmatprep.subr.bf16.mxu1 %v2930_v42 }
 0x260   :  { %2068 = vmatpush1.bf16.msra.mxu1 %v2928_v43 }
 0x261   :  { %2069 = vmatprep.subr.bf16.mxu1 %v2933_v44 }
 0x264   :  { %2070 = vmatpush1.bf16.msra.mxu1 %v2931_v45 }
 0x265   :  { %2071 = vmatprep.subr.bf16.mxu1 %v2936_v46 }
 0x268   :  { %2072 = vmatpush1.bf16.msra.mxu1 %v2934_v47  ;;  %v683_v47 = vsub.s32 6, %v3335_v48 }
 0x269   :  { %2073 = vmatprep.subr.bf16.mxu1 %v2939_v52 }
 0x26a   :  { %v684_v52 = vrot.slane %v3862_v60, %v683_v47 }
 0x26c   :  { %2074 = vmatpush1.bf16.msra.mxu1 %v2937_v53 }
 0x26d   :  { %2075 = vmatprep.subr.bf16.mxu1 %v2942_v54 }
 0x270   :  { %2076 = vmatpush1.bf16.msra.mxu1 %v2940_v55 }
 0x271   :  { %2077 = vmatprep.subr.bf16.mxu1 %v2945_v56 }
 0x274   :  { %2078 = vmatpush1.bf16.msra.mxu1 %v2943_v57 }
 0x275   :  { %2079 = vmatprep.subr.bf16.mxu1 %v2948_v58 }
 0x278   :  { %2080 = vmatpush1.bf16.msra.mxu1 %v2946_v59 }
 0x27b   :  { %2082 = vmatmul.mubr.bf16.vlgmr.msra.gmra.mrb[4].mxu1 %v3568_v19  ;;  %v672_v19 = vrot.slane %v3862_v60, %v143_v22 }
 0x2ce   :  { %v1919_v3 = vpop.f32.mrb[0].mxu1  ;;  %v2001_v4 = vpop.f32.mrb[12].mxu0 }
 0x2cf   :  { %v2559_v5 = vadd.f32 %v1919_v3, %v660_v61  ;;  %v2561_v6 = vadd.f32 %v2001_v4, %v668_v63  ;;  %v1921_v7 = vpop.f32.mrb[1].mxu1  ;;  %v2003_v8 = vpop.f32.mrb[13].mxu0  ;;  %v2218_v3 = vld [vmem:[%s3952_s1 + $0x30] sm:$0xff] }
 0x2d0   :  { %v2560_v9 = vadd.f32 %v1921_v7, %v664_v2  ;;  %v2562_v49 = vadd.f32 %v2003_v8, %v672_v19  ;;  %v1923_v50 = vpop.f32.mrb[2].mxu1  ;;  %v2005_v10 = vpop.f32.mrb[14].mxu0  ;;  %v675_v7 = vsub.s32 4, %v3335_v48  ;;  %v679_v8 = vsub.s32 5, %v3335_v48 }
 0x2d1   :  { %v2170_v11 = vsub.f32 0.0, %v2559_v5  ;;  %v2172_v0 = vsub.f32 0.0, %v2561_v6  ;;  %v1924_v12 = vpop.f32.mrb[3].mxu1  ;;  %v2006_v13 = vpop.f32.mrb[15].mxu0 }
 0x2d2   :  { %v2171_v14 = vsub.f32 0.0, %v2560_v9  ;;  %v2173_v51 = vsub.f32 0.0, %v2562_v49  ;;  %v676_v9 = vrot.slane %v3862_v60, %v675_v7  ;;  %v680_v49 = vrot.slane %v3862_v60, %v679_v8  ;;  %v2216_v60 = vld [vmem:[%s3952_s1 + $0x20] sm:$0xff] }
 0x2d3   :  { %v2177_v15 = vmul.f32 1.442695, %v2170_v11  ;;  %v2181_v16 = vmul.f32 1.442695, %v2172_v0 }
 0x2d4   :  { %v2179_v17 = vmul.f32 1.442695, %v2171_v14  ;;  %v2183_v22 = vmul.f32 1.442695, %v2173_v51 }
 0x2d5   :  { %2949 = vpow2.f32 %v2177_v15 }
 0x2d6   :  { %2951 = vpow2.f32 %v2181_v16 }
 0x2d7   :  { %2953 = vpow2.f32 %v2179_v17 }
 0x2d8   :  { %2955 = vpow2.f32 %v2183_v22 }
 0x2df   :  { %v2950_v18 = vpop.eup %2949 }
 0x2e0   :  { %v2952_v20 = vpop.eup %2951  ;;  %v2191_v21 = vadd.f32 1.0, %v2950_v18 }
 0x2e1   :  { %v2954_v23 = vpop.eup %2953  ;;  %v2193_v24 = vadd.f32 1.0, %v2952_v20  ;;  %v2217_v20 = vld [vmem:[%s3952_s1 + $0x28] sm:$0xff] }
 0x2e2   :  { %v2956_v25 = vpop.eup %2955  ;;  %2957 = vrcp.f32 %v2191_v21  ;;  %v2192_v26 = vadd.f32 1.0, %v2954_v23 }
 0x2e3   :  { %2959 = vrcp.f32 %v2193_v24  ;;  %v2194_v27 = vadd.f32 1.0, %v2956_v25 }
 0x2e4   :  { %2961 = vrcp.f32 %v2192_v26 }
 0x2e5   :  { %2963 = vrcp.f32 %v2194_v27 }
 0x2ec   :  { %v2958_v29 = vpop.eup %2957 }
 0x2ed   :  { %v2960_v1 = vpop.eup %2959  ;;  %2205 = vst [vmem:[%s3953_s8] sm:$0xff] %v2958_v29  ;;  %v2219_v40 = vsub.f32 %v2958_v29, %v2212_v28 }
 0x2ee   :  { %v2962_v32 = vpop.eup %2961  ;;  %2207 = vst [vmem:[%s3953_s8 + $0x10] sm:$0xff] %v2960_v1  ;;  %v2221_v33 = vsub.f32 %v2960_v1, %v2214_v62 }
 0x2ef   :  { %v2964_v34 = vpop.eup %2963  ;;  %v2226_v35 = vmul.f32 %v2219_v40, %v2219_v40  ;;  %2206 = vst [vmem:[%s3953_s8 + $0x8] sm:$0xff] %v2962_v32  ;;  %v2220_v36 = vsub.f32 %v2962_v32, %v2213_v30  ;;  %v2525_v37 = vpop.f32.mrb[16].mxu0 }
 0x2f0   :  { %v2228_v38 = vmul.f32 %v2221_v33, %v2221_v33  ;;  %2208 = vst [vmem:[%s3953_s8 + $0x18] sm:$0xff] %v2964_v34  ;;  %v2222_v39 = vsub.f32 %v2964_v34, %v2215_v31  ;;  %v2526_v41 = vpop.f32.mrb[17].mxu0 }
 0x2f1   :  { %2233 = vst [vmem:[%s3954_s9] sm:$0xff] %v2226_v35  ;;  %v2227_v42 = vmul.f32 %v2220_v36, %v2220_v36  ;;  %v2527_v43 = vadd.f32 %v2526_v41, %v2525_v37  ;;  %v2528_v44 = vpop.f32.mrb[18].mxu0 }
 0x2f2   :  { %2235 = vst [vmem:[%s3954_s9 + $0x10] sm:$0xff] %v2228_v38  ;;  %v2229_v45 = vmul.f32 %v2222_v39, %v2222_v39  ;;  %v2529_v46 = vpop.f32.mrb[19].mxu0 }
 0x2f3   :  { %2234 = vst [vmem:[%s3954_s9 + $0x8] sm:$0xff] %v2227_v42  ;;  %v2125_v55 = vadd.f32 %v2527_v43, %v684_v52 }
 0x2f4   :  { %2236 = vst [vmem:[%s3954_s9 + $0x18] sm:$0xff] %v2229_v45 }
 0x30f   :  { %v2547_v53 = vpop.f32.mrb[20].mxu0 }
 0x310   :  { %v2548_v54 = vpop.f32.mrb[21].mxu0 }
 0x311   :  { %v2549_v56 = vadd.f32 %v2548_v54, %v2547_v53  ;;  %v2550_v57 = vpop.f32.mrb[22].mxu0 }
 0x312   :  { %v2551_v58 = vpop.f32.mrb[23].mxu0 }
 0x313   :  { %v2165_v59 = vadd.f32 %v2549_v56, %v2125_v55 }
 0x315   :  { %v2176_v61 = vsub.f32 0.0, %v2165_v59 }
 0x317   :  { %v2189_v63 = vmul.f32 1.442695, %v2176_v61 }
 0x319   :  { %2965 = vpow2.f32 %v2189_v63 }
 0x323   :  { %v2966_v2 = vpop.eup %2965 }
 0x324   :  { %v2197_v19 = vadd.f32 1.0, %v2966_v2 }
 0x326   :  { %2967 = vrcp.f32 %v2197_v19 }
 0x330   :  { %v2968_v4 = vpop.eup %2967 }
 0x331   :  { %2211 = vst [vmem:[%s3953_s8 + $0x30] sm:$0xff] %v2968_v4  ;;  %v2225_v5 = vsub.f32 %v2968_v4, %v2218_v3 }
 0x333   :  { %v2232_v6 = vmul.f32 %v2225_v5, %v2225_v5 }
 0x335   :  { %2239 = vst [vmem:[%s3954_s9 + $0x30] sm:$0xff] %v2232_v6 }
 0x34e   :  { %v2083_v50 = vpop.f32.mrb[4].mxu1 }
 0x34f   :  { %v2563_v10 = vadd.f32 %v2083_v50, %v676_v9  ;;  %v2085_v11 = vpop.f32.mrb[5].mxu1 }
 0x350   :  { %v2564_v0 = vadd.f32 %v2085_v11, %v680_v49  ;;  %v2087_v12 = vpop.f32.mrb[6].mxu1 }
 0x351   :  { %v2174_v13 = vsub.f32 0.0, %v2563_v10  ;;  %v2088_v14 = vpop.f32.mrb[7].mxu1 }
 0x352   :  { %v2175_v51 = vsub.f32 0.0, %v2564_v0 }
 0x353   :  { %v2185_v15 = vmul.f32 1.442695, %v2174_v13 }
 0x354   :  { %v2187_v16 = vmul.f32 1.442695, %v2175_v51 }
 0x355   :  { %2969 = vpow2.f32 %v2185_v15 }
 0x356   :  { %2971 = vpow2.f32 %v2187_v16 }
 0x35f   :  { %v2970_v17 = vpop.eup %2969 }
 0x360   :  { %v2972_v22 = vpop.eup %2971  ;;  %v2195_v18 = vadd.f32 1.0, %v2970_v17 }
 0x361   :  { %v2196_v48 = vadd.f32 1.0, %v2972_v22 }
 0x362   :  { %2973 = vrcp.f32 %v2195_v18 }
 0x363   :  { %2975 = vrcp.f32 %v2196_v48 }
 0x36c   :  { %v2974_v21 = vpop.eup %2973 }
 0x36d   :  { %v2976_v23 = vpop.eup %2975  ;;  %2209 = vst [vmem:[%s3953_s8 + $0x20] sm:$0xff] %v2974_v21  ;;  %v2223_v24 = vsub.f32 %v2974_v21, %v2216_v60 }
 0x36e   :  { %2210 = vst [vmem:[%s3953_s8 + $0x28] sm:$0xff] %v2976_v23  ;;  %v2224_v25 = vsub.f32 %v2976_v23, %v2217_v20 }
 0x36f   :  { %v2230_v26 = vmul.f32 %v2223_v24, %v2223_v24 }
 0x370   :  { %v2231_v27 = vmul.f32 %v2224_v25, %v2224_v25 }
 0x371   :  { %2237 = vst [vmem:[%s3954_s9 + $0x20] sm:$0xff] %v2230_v26 }
 0x372   :  { %2238 = vst [vmem:[%s3954_s9 + $0x28] sm:$0xff] %v2231_v27 }

</bundles_post_ra>
